<compile_context>
chip_gen: v7x
topology: tpu7x:2x2x1
jax: 0.10.0
libtpu: 0.0.40
codegen_flags: <defaults>
</compile_context>

<pallas_src>
import jax
import jax.numpy as jnp
from jax.experimental import pallas as pl
from jax.experimental.pallas import tpu as pltpu


def _ceil_to(x, m):
    return ((x + m - 1) // m) * m


def _graphsage_kernel(a_ref, hk_ref, hi_ref, wt_ref, out_ref, nsum_acc, deg_acc):
    k = pl.program_id(1)

    # ---- init accumulators on the first reduction tile ----
    @pl.when(k == 0)
    def _():
        nsum_acc[...] = jnp.zeros_like(nsum_acc)
        deg_acc[...] = jnp.zeros_like(deg_acc)

    # ---- accumulate this adjacency tile ----
    mask = (a_ref[...] != 0).astype(jnp.float32)                  # (TM, TK), exact 0/1
    deg_acc[...] += jnp.sum(mask, axis=1, keepdims=True)          # (TM, 1)  XLU reduce
    nsum_acc[...] += jnp.dot(mask, hk_ref[...],
                             preferred_element_type=jnp.float32)  # (TM, Dp) MXU

    # ---- finalize on the last reduction tile (full-row degree only) ----
    @pl.when(k == pl.num_programs(1) - 1)
    def _():
        h_i = hi_ref[...]
        deg = deg_acc[...]
        agg = (nsum_acc[...] + h_i) / (deg + 1.0)
        temp = jnp.where(deg > 0.0, agg, h_i)
        # weight was pre-transposed in the wrapper: z[n, o] = sum_d temp[n,d] * W[o,d]
        z = jnp.dot(temp, wt_ref[...], preferred_element_type=jnp.float32)
        out_ref[...] = jnp.maximum(z, 0.01 * z)                   # LeakyReLU(0.01)


def graphsage_forward(A, h, weight):
    N = A.shape[0]
    D = h.shape[1]
    assert A.shape == (N, N)
    assert h.shape == (N, D)
    assert weight.shape == (D, D), "reference module requires input_dim == output_dim"

    # ---- lane-dense / tile-aligned zero padding (semantically inert) ----
    Np = _ceil_to(N, 128)
    Dp = _ceil_to(D, 128)

    # Largest power-of-two tiles (under caps) that divide the padded extent.
    tk = next(t for t in (1024, 512, 256, 128) if Np % t == 0)   # reduction axis
    tm = next(t for t in (256, 128) if Np % t == 0)              # output-row axis

    # Adjacency as an int8 nonzero mask: 4x less HBM traffic than f32 for the
    # dominant N^2 stream (mask is exact in any dtype).
    a8 = jnp.pad((A != 0).astype(jnp.int8), ((0, Np - N), (0, Np - N)))
    hp = jnp.pad(h.astype(jnp.float32), ((0, Np - N), (0, Dp - D)))
    # Pre-transpose the weight once so the kernel does a plain NN matmul.
    wt = jnp.pad(weight.astype(jnp.float32).T, ((0, Dp - D), (0, Dp - D)))

    grid = (Np // tm, Np // tk)

    # VMEM budget: double-buffered tiles + resident accumulators (+ headroom).
    vmem_bytes = (
        2 * tm * tk * 1        # adjacency mask tile (int8)
        + 2 * tk * Dp * 4      # neighbor-feature tile
        + 2 * tm * Dp * 4      # self-feature tile
        + 2 * Dp * Dp * 4      # transposed weight tile
        + 2 * tm * Dp * 4      # output tile
        + tm * Dp * 4          # nsum accumulator
        + tm * 128 * 4         # degree accumulator (padded)
    )
    vmem_limit = min(int(1.5 * vmem_bytes) + (4 << 20), 48 << 20)

    out_p = pl.pallas_call(
        _graphsage_kernel,
        out_shape=jax.ShapeDtypeStruct((Np, Dp), jnp.float32),
        grid=grid,
        in_specs=[
            pl.BlockSpec((tm, tk), lambda i, k: (i, k)),   # adjacency tile
            pl.BlockSpec((tk, Dp), lambda i, k: (k, 0)),   # neighbor features (K-indexed)
            pl.BlockSpec((tm, Dp), lambda i, k: (i, 0)),   # self features (row-indexed)
            pl.BlockSpec((Dp, Dp), lambda i, k: (0, 0)),   # transposed weight
        ],
        out_specs=pl.BlockSpec((tm, Dp), lambda i, k: (i, 0)),
        scratch_shapes=[
            pltpu.VMEM((tm, Dp), jnp.float32),   # nsum accumulator
            pltpu.VMEM((tm, 1), jnp.float32),    # degree accumulator
        ],
        compiler_params=pltpu.CompilerParams(
            dimension_semantics=("parallel", "arbitrary"),
            vmem_limit_bytes=vmem_limit,
        ),
    )(a8, hp, hp, wt)

    return out_p[:N, :D]


def graphsage_reference(A, h, weight):
    """Plain-JAX reference mirroring the PyTorch per-node loop semantics."""
    mask = (A != 0).astype(jnp.float32)
    deg = jnp.sum(mask, axis=1, keepdims=True)
    nsum = mask @ h
    temp = jnp.where(deg > 0, (nsum + h) / (deg + 1.0), h)
    z = temp @ weight.T
    return jnp.where(z >= 0, z, 0.01 * z)


if __name__ == "__main__":
    key = jax.random.PRNGKey(0)

    def run_case(case_key, N, D, drop_row):
        k_a, k_h, k_w = jax.random.split(case_key, 3)
        # Sparse-ish binary adjacency; force one node to have zero neighbors
        # to exercise the "count_neighbors == 0" branch.
        A = (jax.random.uniform(k_a, (N, N)) < 0.25).astype(jnp.float32)
        A = A.at[drop_row, :].set(0.0)
        h = jax.random.normal(k_h, (N, D), dtype=jnp.float32)
        weight = jax.random.normal(k_w, (D, D), dtype=jnp.float32)

        out = jax.block_until_ready(graphsage_forward(A, h, weight))
        ref = graphsage_reference(A, h, weight)
        assert out.shape == (N, D)
        assert jnp.allclose(out, ref, atol=1e-3, rtol=1e-3), (
            "max abs err = %g" % float(jnp.max(jnp.abs(out - ref))))

    k1, k2 = jax.random.split(key)
    run_case(k1, N=16, D=32, drop_row=3)     # spec-sized tiny case (grid 1x1)
    run_case(k2, N=384, D=96, drop_row=7)    # multi-tile case (grid 3x3, K reduction)

    print("KERNEL_OK")
</pallas_src>

<mosaic_0001>
module attributes {stable_mosaic.version = 11 : i64} {
  func.func @_graphsage_kernel(%arg0: i32, %arg1: i32, %arg2: memref<128x128xi8, #tpu.memory_space<vmem>>, %arg3: memref<128x128xf32, #tpu.memory_space<vmem>>, %arg4: memref<128x128xf32, #tpu.memory_space<vmem>>, %arg5: memref<128x128xf32, #tpu.memory_space<vmem>>, %arg6: memref<128x128xf32, #tpu.memory_space<vmem>>, %arg7: memref<128x128xf32, #tpu.memory_space<vmem>>, %arg8: memref<128x1xf32, #tpu.memory_space<vmem>>) attributes {dimension_semantics = [#tpu.dimension_semantics<parallel>, #tpu.dimension_semantics<arbitrary>], iteration_bounds = array<i64: 1, 1>, scalar_prefetch = 0 : i64, scratch_operands = 2 : i64, tpu.core_type = #tpu.core_type<tc>, window_params = [{transform_indices = @transform_0, window_bounds = array<i64: 128, 128>}, {transform_indices = @transform_1, window_bounds = array<i64: 128, 128>}, {transform_indices = @transform_2, window_bounds = array<i64: 128, 128>}, {pipeline_mode = #tpu.pipeline_mode<synchronous>, transform_indices = @transform_3, window_bounds = array<i64: 128, 128>}, {transform_indices = @transform_4, window_bounds = array<i64: 128, 128>}]} {
    %c0_i32 = arith.constant 0 : i32
    %0 = arith.cmpi eq, %arg1, %c0_i32 : i32
    %1 = arith.extui %0 : i1 to i32
    %c0_i32_0 = arith.constant 0 : i32
    %2 = arith.cmpi ne, %1, %c0_i32_0 : i32
    scf.if %2 {
      %cst_15 = arith.constant 0.000000e+00 : f32
      %21 = vector.broadcast %cst_15 : f32 to vector<128x128xf32>
      %c0_16 = arith.constant 0 : index
      %c0_17 = arith.constant 0 : index
      %22 = vector.load %arg7[%c0_16, %c0_17] : memref<128x128xf32, #tpu.memory_space<vmem>>, vector<128x128xf32>
      tpu.vector_store %arg7[%c0_16, %c0_17], %21 {strides = array<i32>} : memref<128x128xf32, #tpu.memory_space<vmem>>, vector<128x128xf32>,
      %cst_18 = arith.constant 0.000000e+00 : f32
      %23 = vector.broadcast %cst_18 : f32 to vector<128x1xf32>
      %c0_19 = arith.constant 0 : index
      %c0_20 = arith.constant 0 : index
      %24 = vector.load %arg8[%c0_19, %c0_20] : memref<128x1xf32, #tpu.memory_space<vmem>>, vector<128x1xf32>
      tpu.vector_store %arg8[%c0_19, %c0_20], %23 {strides = array<i32>} : memref<128x1xf32, #tpu.memory_space<vmem>>, vector<128x1xf32>,
    } else {
    }
    %c0 = arith.constant 0 : index
    %c0_1 = arith.constant 0 : index
    %3 = vector.load %arg2[%c0, %c0_1] : memref<128x128xi8, #tpu.memory_space<vmem>>, vector<128x128xi8>
    %c0_i8 = arith.constant 0 : i8
    %4 = vector.broadcast %c0_i8 : i8 to vector<128x128xi8>
    %5 = arith.cmpi ne, %3, %4 : vector<128x128xi8>
    %6 = arith.extui %5 : vector<128x128xi1> to vector<128x128xi32>
    %7 = arith.sitofp %6 : vector<128x128xi32> to vector<128x128xf32>
    %c0_2 = arith.constant 0 : index
    %c0_3 = arith.constant 0 : index
    %8 = vector.load %arg8[%c0_2, %c0_3] : memref<128x1xf32, #tpu.memory_space<vmem>>, vector<128x1xf32>
    %cst = arith.constant dense<0.000000e+00> : vector<128xf32>
    %9 = vector.multi_reduction <add>, %7, %cst [1] : vector<128x128xf32> to vector<128xf32>
    %10 = vector.shape_cast %9 : vector<128xf32> to vector<128x1xf32>
    %11 = arith.addf %8, %10 : vector<128x1xf32>
    %c0_4 = arith.constant 0 : index
    %c0_5 = arith.constant 0 : index
    %12 = vector.load %arg8[%c0_4, %c0_5] : memref<128x1xf32, #tpu.memory_space<vmem>>, vector<128x1xf32>
    tpu.vector_store %arg8[%c0_4, %c0_5], %11 {strides = array<i32>} : memref<128x1xf32, #tpu.memory_space<vmem>>, vector<128x1xf32>,
    %c0_6 = arith.constant 0 : index
    %c0_7 = arith.constant 0 : index
    %13 = vector.load %arg7[%c0_6, %c0_7] : memref<128x128xf32, #tpu.memory_space<vmem>>, vector<128x128xf32>
    %c0_8 = arith.constant 0 : index
    %c0_9 = arith.constant 0 : index
    %14 = vector.load %arg3[%c0_8, %c0_9] : memref<128x128xf32, #tpu.memory_space<vmem>>, vector<128x128xf32>
    %cst_10 = arith.constant dense<0.000000e+00> : vector<128x128xf32>
    %15 = tpu.matmul %7, %14, %cst_10 {dimension_numbers = #tpu.dot_dimension_numbers<[1], [0], [0], [1], [0, 0, 1, 1], [], []>} : vector<128x128xf32>, vector<128x128xf32>, vector<128x128xf32> -> vector<128x128xf32>
    %16 = arith.addf %13, %15 : vector<128x128xf32>
    %c0_11 = arith.constant 0 : index
    %c0_12 = arith.constant 0 : index
    %17 = vector.load %arg7[%c0_11, %c0_12] : memref<128x128xf32, #tpu.memory_space<vmem>>, vector<128x128xf32>
    tpu.vector_store %arg7[%c0_11, %c0_12], %16 {strides = array<i32>} : memref<128x128xf32, #tpu.memory_space<vmem>>, vector<128x128xf32>,
    %c0_i32_13 = arith.constant 0 : i32
    %18 = arith.cmpi eq, %arg1, %c0_i32_13 : i32
    %19 = arith.extui %18 : i1 to i32
    %c0_i32_14 = arith.constant 0 : i32
    %20 = arith.cmpi ne, %19, %c0_i32_14 : i32
    scf.if %20 {
      %c0_15 = arith.constant 0 : index
      %c0_16 = arith.constant 0 : index
      %21 = vector.load %arg4[%c0_15, %c0_16] : memref<128x128xf32, #tpu.memory_space<vmem>>, vector<128x128xf32>
      %c0_17 = arith.constant 0 : index
      %c0_18 = arith.constant 0 : index
      %22 = vector.load %arg8[%c0_17, %c0_18] : memref<128x1xf32, #tpu.memory_space<vmem>>, vector<128x1xf32>
      %c0_19 = arith.constant 0 : index
      %c0_20 = arith.constant 0 : index
      %23 = vector.load %arg7[%c0_19, %c0_20] : memref<128x128xf32, #tpu.memory_space<vmem>>, vector<128x128xf32>
      %24 = arith.addf %23, %21 : vector<128x128xf32>
      %cst_21 = arith.constant 1.000000e+00 : f32
      %25 = vector.broadcast %cst_21 : f32 to vector<128x1xf32>
      %26 = arith.addf %22, %25 : vector<128x1xf32>
      %27 = vector.broadcast %26 : vector<128x1xf32> to vector<128x128xf32>
      %28 = arith.divf %24, %27 : vector<128x128xf32>
      %cst_22 = arith.constant 0.000000e+00 : f32
      %29 = vector.broadcast %cst_22 : f32 to vector<128x1xf32>
      %30 = arith.cmpf ogt, %22, %29 : vector<128x1xf32>
      %31 = vector.shape_cast %30 : vector<128x1xi1> to vector<128x1xi1>
      %32 = vector.broadcast %31 : vector<128x1xi1> to vector<128x128xi1>
      %33 = arith.select %32, %28, %21 : vector<128x128xi1>, vector<128x128xf32>
      %c0_23 = arith.constant 0 : index
      %c0_24 = arith.constant 0 : index
      %34 = vector.load %arg5[%c0_23, %c0_24] : memref<128x128xf32, #tpu.memory_space<vmem>>, vector<128x128xf32>
      %cst_25 = arith.constant dense<0.000000e+00> : vector<128x128xf32>
      %35 = tpu.matmul %33, %34, %cst_25 {dimension_numbers = #tpu.dot_dimension_numbers<[1], [0], [0], [1], [0, 0, 1, 1], [], []>} : vector<128x128xf32>, vector<128x128xf32>, vector<128x128xf32> -> vector<128x128xf32>
      %cst_26 = arith.constant 0.00999999977 : f32
      %36 = vector.broadcast %cst_26 : f32 to vector<128x128xf32>
      %37 = arith.mulf %36, %35 : vector<128x128xf32>
      %38 = arith.maximumf %35, %37 : vector<128x128xf32>
      %c0_27 = arith.constant 0 : index
      %c0_28 = arith.constant 0 : index
      %39 = vector.load %arg6[%c0_27, %c0_28] : memref<128x128xf32, #tpu.memory_space<vmem>>, vector<128x128xf32>
      tpu.vector_store %arg6[%c0_27, %c0_28], %38 {strides = array<i32>} : memref<128x128xf32, #tpu.memory_space<vmem>>, vector<128x128xf32>,
    } else {
    }
    return
  }
  func.func @transform_0(%arg0: i32, %arg1: i32) -> (i32, i32) {
    %c0_i32 = arith.constant 0 : i32
    return %arg0, %arg1 : i32, i32
  }
  func.func @transform_1(%arg0: i32, %arg1: i32) -> (i32, i32) {
    %c0_i32 = arith.constant 0 : i32
    %c0_i32_0 = arith.constant 0 : i32
    return %arg1, %c0_i32 : i32, i32
  }
  func.func @transform_2(%arg0: i32, %arg1: i32) -> (i32, i32) {
    %c0_i32 = arith.constant 0 : i32
    %c0_i32_0 = arith.constant 0 : i32
    return %arg0, %c0_i32 : i32, i32
  }
  func.func @transform_3(%arg0: i32, %arg1: i32) -> (i32, i32) {
    %c0_i32 = arith.constant 0 : i32
    %c0_i32_0 = arith.constant 0 : i32
    %c0_i32_1 = arith.constant 0 : i32
    return %c0_i32, %c0_i32_0 : i32, i32
  }
  func.func @transform_4(%arg0: i32, %arg1: i32) -> (i32, i32) {
    %c0_i32 = arith.constant 0 : i32
    %c0_i32_0 = arith.constant 0 : i32
    return %arg0, %c0_i32 : i32, i32
  }
}

</mosaic_0001>

<bundles_post_ra>
// kernel: tpu_custom_call.1
= control target key start
LH: loop header
LB: loop body
LE: loop exit
PB: predicated region body
PF: predicated region fallthrough
CT: control target
= control target key end

     0   :  { %9 = vsyncpa [#allocation5], 0  ;;  %s1945_s0 = inlined_call_operand.hbm [shape: s8[128,128], index: 0, kind: input, shape index: {}]   ;;  %s1946_s1 = inlined_call_operand.hbm [shape: f32[128,128], index: 1, kind: input, shape index: {}]   ;;  %s1947_s2 = inlined_call_operand.hbm [shape: f32[128,128], index: 2, kind: input, shape index: {}]   ;;  %s1948_s3 = inlined_call_operand.hbm [shape: f32[128,128], index: 3, kind: input, shape index: {}]   ;;  %s1949_s4 = inlined_call_operand.hbm [shape: f32[128,128], index: 4, kind: output, shape index: {}]  }
   0x1   :  { %10 = vsyncpa [#allocation8], 0 }
   0x2   :  { %11 = vsyncpa [#allocation11], 0 }
   0x3   :  { %12 = vsyncpa [#allocation6], 0  ;;  %s1527_s15 = smov [#allocation7]   ;;  %s1528_s17 = smov [#allocation4]  }
   0x4   :  { %s30_s16 = sshll.u32 %s1527_s15, 4  ;;  %s18_s18 = sshll.u32 %s1528_s17, 4  ;;  %s31_s16 = int_to_ptr.vmem [resolvable:$true] %s30_s16  ;;  %s1562_s18 = int_to_ptr.vmem [resolvable:$true] %s18_s18 }
   0x5   :  { %s1409_s21 = scalar_lea.hbm %s1946_s1, 2048 }
   0x6   :  { %p1410_p0 = scmp.ne.s32.totalorder %s1946_s1, %s1409_s21  ;;  %p1413_p1 = scmp.lt.u32.totalorder %s1409_s21, %s1946_s1 }
   0x8   :  { %p1415_p2 = pnand %p1413_p1, %p1410_p0 }
   0xa   :  { %1418 = shalt.err (!%p1415_p2)
}
   0xb   :  { %s1419_s26 = scalar_lea.vmem %s31_s16, 2048  ;;  %p1424_p4 = scmp.lt.s32.totalorder %s31_s16, %s31_s16 }
   0xc   :  { %p1420_p3 = scmp.ne.s32.totalorder %s31_s16, %s1419_s26  ;;  %p1425_p5 = scmp.lt.s32.totalorder %s1419_s26, %s1419_s26 }
   0xe   :  { %p1426_p6 = por %p1425_p5, %p1424_p4 }
  0x10   :  { %p1427_p7 = pnand %p1426_p6, %p1420_p3 }
  0x12   :  { %1430 = shalt.err (!%p1427_p7)
}
  0x13   :  { %s1529_s27 = smov 128   ;;  %s1530_s28 = smov 8  }
  0x14   :  { %36 = dma.hbm_to_vmem [thread:$0]  %s1946_s1, 2048, %s31_s16, [#allocation8], %s1529_s27, %s1529_s27, %s1530_s28  }
  0x15   :  { %s1431_s7 = scalar_lea.hbm %s1945_s0, 512 }
  0x16   :  { %p1432_p8 = scmp.ne.s32.totalorder %s1945_s0, %s1431_s7  ;;  %p1435_p9 = scmp.lt.u32.totalorder %s1431_s7, %s1945_s0 }
  0x18   :  { %p1437_p10 = pnand %p1435_p9, %p1432_p8 }
  0x1a   :  { %1440 = shalt.err (!%p1437_p10)
}
  0x1b   :  { %s1441_s12 = scalar_lea.vmem %s1562_s18, 512  ;;  %p1446_p12 = scmp.lt.s32.totalorder %s1562_s18, %s1562_s18 }
  0x1c   :  { %p1442_p11 = scmp.ne.s32.totalorder %s1562_s18, %s1441_s12  ;;  %p1447_p13 = scmp.lt.s32.totalorder %s1441_s12, %s1441_s12 }
  0x1e   :  { %p1448_p0 = por %p1447_p13, %p1446_p12 }
  0x20   :  { %p1449_p1 = pnand %p1448_p0, %p1442_p11 }
  0x22   :  { %1452 = shalt.err (!%p1449_p1)
}
  0x23   :  { %24 = dma.hbm_to_vmem [thread:$0]  %s1945_s0, 512, %s1562_s18, [#allocation5], %s1529_s27, %s1529_s27, %s1530_s28  }
  0x24   :  { %s1531_s14 = smov [#allocation9]   ;;  %s1532_s16 = smov [#allocation10]  }
  0x25   :  { %s42_s15 = sshll.u32 %s1531_s14, 4  ;;  %s54_s17 = sshll.u32 %s1532_s16, 4  ;;  %s43_s15 = int_to_ptr.vmem [resolvable:$true] %s42_s15  ;;  %s1599_s17 = int_to_ptr.vmem [resolvable:$true] %s54_s17 }
  0x26   :  { %s1453_s21 = scalar_lea.hbm %s1947_s2, 2048 }
  0x27   :  { %p1454_p2 = scmp.ne.s32.totalorder %s1947_s2, %s1453_s21  ;;  %p1457_p3 = scmp.lt.u32.totalorder %s1453_s21, %s1947_s2 }
  0x29   :  { %p1459_p4 = pnand %p1457_p3, %p1454_p2 }
  0x2b   :  { %1462 = shalt.err (!%p1459_p4)
}
  0x2c   :  { %s1463_s0 = scalar_lea.vmem %s43_s15, 2048  ;;  %p1468_p6 = scmp.lt.s32.totalorder %s43_s15, %s43_s15 }
  0x2d   :  { %p1464_p5 = scmp.ne.s32.totalorder %s43_s15, %s1463_s0  ;;  %p1469_p7 = scmp.lt.s32.totalorder %s1463_s0, %s1463_s0 }
  0x2f   :  { %p1470_p8 = por %p1469_p7, %p1468_p6 }
  0x31   :  { %p1471_p9 = pnand %p1470_p8, %p1464_p5 }
  0x33   :  { %1474 = shalt.err (!%p1471_p9)
}
  0x34   :  { %48 = dma.hbm_to_vmem [thread:$0]  %s1947_s2, 2048, %s43_s15, [#allocation8], %s1529_s27, %s1529_s27, %s1530_s28  }
  0x35   :  { %s1475_s5 = scalar_lea.hbm %s1948_s3, 2048 }
  0x36   :  { %p1476_p10 = scmp.ne.s32.totalorder %s1948_s3, %s1475_s5  ;;  %p1479_p11 = scmp.lt.u32.totalorder %s1475_s5, %s1948_s3 }
  0x38   :  { %p1481_p12 = pnand %p1479_p11, %p1476_p10 }
  0x3a   :  { %1484 = shalt.err (!%p1481_p12)
}
  0x3b   :  { %s1485_s10 = scalar_lea.vmem %s1599_s17, 2048  ;;  %p1490_p0 = scmp.lt.s32.totalorder %s1599_s17, %s1599_s17 }
  0x3c   :  { %p1486_p13 = scmp.ne.s32.totalorder %s1599_s17, %s1485_s10  ;;  %p1491_p1 = scmp.lt.s32.totalorder %s1485_s10, %s1485_s10 }
  0x3e   :  { %p1492_p2 = por %p1491_p1, %p1490_p0 }
  0x40   :  { %p1493_p3 = pnand %p1492_p2, %p1486_p13 }
  0x42   :  { %1496 = shalt.err (!%p1493_p3)
}
  0x43   :  { %60 = dma.hbm_to_vmem [thread:$0]  %s1948_s3, 2048, %s1599_s17, [#allocation11], %s1529_s27, %s1529_s27, %s1530_s28  }
  0x44   :  { %1519 = dma.done.wait [#allocation5], 512  }
  0x45   :  { %1520 = vsyncadd [#allocation5], 4294966784 }
  0x46   :  { %1521 = dma.done.wait [#allocation8], 4096  }
  0x47   :  { %1522 = vsyncadd [#allocation8], 4294963200 }
  0x48   :  { %1523 = dma.done.wait [#allocation11], 2048  }
  0x49   :  { %1524 = vsyncadd [#allocation11], 4294965248  ;;  %vm1950_vm0 = vcmask 7168   ;;  %v1533_v0 = vmov 0.0   ;;  %v1534_v1 = vmov 0   ;;  %v112_v2 = vld [vmem:[#allocation4] sm:$0xff] }
  0x4a   :  { %96 = vst.msk [vmem:[#allocation3] sm:$0xff] %vm1950_vm0, %v1533_v0  ;;  %97 = vst.msk [vmem:[#allocation3 + $0x8] sm:$0xff] %vm1950_vm0, %v1533_v0  ;;  %1375 = vset.pattern.permute.xlu0 %v1534_v1  ;;  %1376 = vset.pattern.permute.xlu1 %v1534_v1  ;;  %v113_v3 = vld [vmem:[#allocation4 + $0x8] sm:$0xff]  ;;  %v114_v4 = vld [vmem:[#allocation4 + $0x10] sm:$0xff]  ;;  %vm116_vm1 = vnez %v112_v2  ;;  %v1535_v51 = vmov 1.0   ;;  %s1536_s3 = smov [#allocation12]  }
  0x4b   :  { %98 = vst.msk [vmem:[#allocation3 + $0x10] sm:$0xff] %vm1950_vm0, %v1533_v0  ;;  %99 = vst.msk [vmem:[#allocation3 + $0x18] sm:$0xff] %vm1950_vm0, %v1533_v0  ;;  %vm117_vm2 = vnez %v113_v3  ;;  %vm118_vm3 = vnez %v114_v4  ;;  %v120_v5 = vsel %vm116_vm1, 16843009, %v1534_v1  ;;  %v115_v16 = vld [vmem:[#allocation4 + $0x18] sm:$0xff]  ;;  %v371_v42 = vld [vmem:[#allocation7 + $0x30] sm:$0xff] }
  0x4c   :  { %100 = vst.msk [vmem:[#allocation3 + $0x20] sm:$0xff] %vm1950_vm0, %v1533_v0  ;;  %101 = vst.msk [vmem:[#allocation3 + $0x28] sm:$0xff] %vm1950_vm0, %v1533_v0  ;;  %v121_v6 = vsel %vm117_vm2, 16843009, %v1534_v1  ;;  %v1673_v7 = vsel %vm118_vm3, 16843009, %v1534_v1  ;;  %v124_v8 = vunpack.c.0.s8 %v120_v5  ;;  %v125_v9 = vunpack.c.1.s8 %v120_v5 }
  0x4d   :  { %102 = vst.msk [vmem:[#allocation3 + $0x30] sm:$0xff] %vm1950_vm0, %v1533_v0  ;;  %103 = vst.msk [vmem:[#allocation3 + $0x38] sm:$0xff] %vm1950_vm0, %v1533_v0  ;;  %v126_v10 = vunpack.c.2.s8 %v120_v5  ;;  %v127_v11 = vunpack.c.3.s8 %v120_v5  ;;  %v128_v12 = vunpack.c.0.s8 %v121_v6  ;;  %v129_v13 = vunpack.c.1.s8 %v121_v6  ;;  %v365_v5 = vld [vmem:[#allocation7] sm:$0xff]  ;;  %v372_v43 = vld [vmem:[#allocation7 + $0x38] sm:$0xff]  ;;  %s1079_s12 = sshll.u32 %s1536_s3, 4  ;;  %s1080_s12 = int_to_ptr.vmem [resolvable:$true] %s1079_s12 }
  0x4e   :  { %104 = vst.msk [vmem:[#allocation3 + $0x40] sm:$0xff] %vm1950_vm0, %v1533_v0  ;;  %105 = vst.msk [vmem:[#allocation3 + $0x48] sm:$0xff] %vm1950_vm0, %v1533_v0  ;;  %v130_v14 = vunpack.c.2.s8 %v121_v6  ;;  %v131_v15 = vunpack.c.3.s8 %v121_v6  ;;  %v140_v17 = vpack.c.b16 %v124_v8, %v124_v8  ;;  %v142_v18 = vpack.c.b16 %v125_v9, %v125_v9  ;;  %v366_v6 = vld [vmem:[#allocation7 + $0x8] sm:$0xff]  ;;  %s1497_s1 = scalar_lea.vmem %s1080_s12, 2048  ;;  %p1502_p5 = scmp.lt.s32.totalorder %s1080_s12, %s1080_s12 }
  0x4f   :  { %106 = vst.msk [vmem:[#allocation3 + $0x50] sm:$0xff] %vm1950_vm0, %v1533_v0  ;;  %107 = vst.msk [vmem:[#allocation3 + $0x58] sm:$0xff] %vm1950_vm0, %v1533_v0  ;;  %v144_v19 = vpack.c.b16 %v126_v10, %v126_v10  ;;  %v146_v20 = vpack.c.b16 %v127_v11, %v127_v11  ;;  %v148_v21 = vpack.c.b16 %v128_v12, %v128_v12  ;;  %vm119_vm4 = vnez %v115_v16  ;;  %v367_v16 = vld [vmem:[#allocation7 + $0x10] sm:$0xff]  ;;  %v866_v44 = vld [vmem:[#allocation10 + $0x8] sm:$0xff]  ;;  %p1498_p4 = scmp.ne.s32.totalorder %s1080_s12, %s1497_s1  ;;  %p1503_p6 = scmp.lt.s32.totalorder %s1497_s1, %s1497_s1 }
  0x50   :  { %108 = vst.msk [vmem:[#allocation3 + $0x60] sm:$0xff] %vm1950_vm0, %v1533_v0  ;;  %109 = vst.msk [vmem:[#allocation3 + $0x68] sm:$0xff] %vm1950_vm0, %v1533_v0  ;;  %v150_v22 = vpack.c.b16 %v129_v13, %v129_v13  ;;  %v152_v23 = vpack.c.b16 %v130_v14, %v130_v14  ;;  %v154_v24 = vpack.c.b16 %v131_v15, %v131_v15  ;;  %v132_v60 = vunpack.c.0.s8 %v1673_v7 }
  0x51   :  { %110 = vst.msk [vmem:[#allocation3 + $0x70] sm:$0xff] %vm1950_vm0, %v1533_v0  ;;  %111 = vst.msk [vmem:[#allocation3 + $0x78] sm:$0xff] %vm1950_vm0, %v1533_v0  ;;  %v141_v25 = vpack.c.b8 %v140_v17, %v140_v17  ;;  %v143_v26 = vpack.c.b8 %v142_v18, %v142_v18  ;;  %v145_v27 = vpack.c.b8 %v144_v19, %v144_v19  ;;  %v133_v61 = vunpack.c.1.s8 %v1673_v7  ;;  %v368_v17 = vld [vmem:[#allocation7 + $0x18] sm:$0xff]  ;;  %v268_v50 = vld [vmem:[#allocation3] sm:$0xff]  ;;  %p1504_p7 = por %p1503_p6, %p1502_p5 }
  0x52   :  { %v147_v28 = vpack.c.b8 %v146_v20, %v146_v20  ;;  %v149_v29 = vpack.c.b8 %v148_v21, %v148_v21  ;;  %v151_v30 = vpack.c.b8 %v150_v22, %v150_v22  ;;  %v153_v31 = vpack.c.b8 %v152_v23, %v152_v23  ;;  %v270_v53 = vld [vmem:[#allocation3 + $0x10] sm:$0xff] }
  0x53   :  { %v155_v32 = vpack.c.b8 %v154_v24, %v154_v24  ;;  %vm172_vm5 = vnez %v141_v25  ;;  %vm173_vm6 = vnez %v143_v26  ;;  %vm174_vm7 = vnez %v145_v27  ;;  %p1505_p8 = pnand %p1504_p7, %p1498_p4 }
  0x54   :  { %vm175_vm8 = vnez %v147_v28  ;;  %v188_v33 = vsel %vm172_vm5, 16843009, %v1534_v1  ;;  %v189_v34 = vsel %vm173_vm6, 16843009, %v1534_v1  ;;  %v190_v35 = vsel %vm174_vm7, 16843009, %v1534_v1 }
  0x55   :  { %vm176_vm9 = vnez %v149_v29  ;;  %v204_v36 = vunpack.c.0.s8 %v188_v33  ;;  %v205_v37 = vunpack.c.0.s8 %v189_v34  ;;  %v206_v38 = vunpack.c.0.s8 %v190_v35 }
  0x56   :  { %v191_v39 = vsel %vm175_vm8, 16843009, %v1534_v1  ;;  %v192_v41 = vsel %vm176_vm9, 16843009, %v1534_v1  ;;  %vm1680_vm10 = vnez %v151_v30  ;;  %vm1684_vm11 = vnez %v153_v31 }
  0x57   :  { %v207_v40 = vunpack.c.0.s8 %v191_v39  ;;  %vm220_vm12 = vcmp.ne.s32.totalorder %v204_v36, 0  ;;  %vm1688_vm13 = vcmp.ne.s32.totalorder %v205_v37, 0  ;;  %vm1692_vm14 = vcmp.ne.s32.totalorder %v206_v38, 0  ;;  %v369_v37 = vld [vmem:[#allocation7 + $0x20] sm:$0xff]  ;;  %v370_v38 = vld [vmem:[#allocation7 + $0x28] sm:$0xff] }
  0x58   :  { %v208_v46 = vunpack.c.0.s8 %v192_v41  ;;  %v1093_v47 = vsel %vm220_vm12, 1.0, %v1533_v0  ;;  %v1094_v48 = vsel %vm1688_vm13, 1.0, %v1533_v0  ;;  %v1095_v49 = vsel %vm1692_vm14, 1.0, %v1533_v0  ;;  %1221 = vmatprep.mubr.msk.f32.mxu0 %vm220_vm12, %v1535_v51  ;;  %v273_v39 = vld [vmem:[#allocation3 + $0x28] sm:$0xff] }
  0x59   :  { %vm1703_vm15 = vcmp.ne.s32.totalorder %v207_v40, 0  ;;  %284 = vadd.xlane.f32.xlu0 %v1093_v47  ;;  %288 = vadd.xlane.f32.xlu1 %v1095_v49  ;;  %v193_v54 = vsel %vm1680_vm10, 16843009, %v1534_v1  ;;  %v194_v55 = vsel %vm1684_vm11, 16843009, %v1534_v1  ;;  %vm179_vm2 = vnez %v155_v32 }
  0x5a   :  { %v1096_v52 = vsel %vm1703_vm15, 1.0, %v1533_v0  ;;  %vm1711_vm1 = vcmp.ne.s32.totalorder %v208_v46, 0  ;;  %v209_v57 = vunpack.c.0.s8 %v193_v54  ;;  %v210_v58 = vunpack.c.0.s8 %v194_v55 }
  0x5b   :  { %v1097_v56 = vsel %vm1711_vm1, 1.0, %v1533_v0  ;;  %v195_v59 = vsel %vm179_vm2, 16843009, %v1534_v1  ;;  %v135_v62 = vunpack.c.3.s8 %v1673_v7  ;;  %v1738_v4 = vsel %vm119_vm4, 16843009, %v1534_v1 }
  0x5c   :  { %vm1728_vm3 = vcmp.ne.s32.totalorder %v209_v57, 0  ;;  %vm1732_vm5 = vcmp.ne.s32.totalorder %v210_v58, 0  ;;  %v211_v3 = vunpack.c.0.s8 %v195_v59  ;;  %v156_v10 = vpack.c.b16 %v132_v60, %v132_v60 }
  0x5d   :  { %286 = vadd.xlane.f32.xlu0 %v1094_v48  ;;  %290 = vadd.xlane.f32.xlu1 %v1096_v52  ;;  %v1098_v8 = vsel %vm1728_vm3, 1.0, %v1533_v0  ;;  %v1099_v9 = vsel %vm1732_vm5, 1.0, %v1533_v0  ;;  %v158_v11 = vpack.c.b16 %v133_v61, %v133_v61  ;;  %v162_v13 = vpack.c.b16 %v135_v62, %v135_v62  ;;  %v373_v61 = vld [vmem:[#allocation7 + $0x40] sm:$0xff]  ;;  %v374_v62 = vld [vmem:[#allocation7 + $0x48] sm:$0xff]  ;;  %v275_v48 = vld [vmem:[#allocation3 + $0x38] sm:$0xff] }
  0x5e   :  { %vm1746_vm6 = vcmp.ne.s32.totalorder %v211_v3, 0  ;;  %v137_v14 = vunpack.c.1.s8 %v1738_v4  ;;  %v134_v15 = vunpack.c.2.s8 %v1673_v7  ;;  %v157_v19 = vpack.c.b8 %v156_v10, %v156_v10 }
  0x5f   :  { %v1100_v18 = vsel %vm1746_vm6, 1.0, %v1533_v0  ;;  %v159_v20 = vpack.c.b8 %v158_v11, %v158_v11  ;;  %v1301_v21 = vpack.c.bf16 %v366_v6, %v365_v5  ;;  %v163_v22 = vpack.c.b8 %v162_v13, %v162_v13 }
  0x60   :  { %v166_v23 = vpack.c.b16 %v137_v14, %v137_v14  ;;  %v160_v24 = vpack.c.b16 %v134_v15, %v134_v15  ;;  %v139_v25 = vunpack.c.3.s8 %v1738_v4  ;;  %vm180_vm4 = vnez %v157_v19  ;;  %v869_v14 = vld [vmem:[#allocation10 + $0x20] sm:$0xff] }
  0x61   :  { %292 = vadd.xlane.f32.xlu0 %v1097_v56  ;;  %294 = vadd.xlane.f32.xlu1 %v1098_v8  ;;  %vm181_vm7 = vnez %v159_v20  ;;  %v1305_v26 = vpack.c.bf16 %v368_v17, %v367_v16  ;;  %v136_v7 = vunpack.c.0.s8 %v1738_v4  ;;  %v196_v27 = vsel %vm180_vm4, 16843009, %v1534_v1  ;;  %v375_v16 = vld [vmem:[#allocation7 + $0x50] sm:$0xff]  ;;  %v376_v17 = vld [vmem:[#allocation7 + $0x58] sm:$0xff] }
  0x62   :  { %v197_v28 = vsel %vm181_vm7, 16843009, %v1534_v1  ;;  %vm183_vm8 = vnez %v163_v22  ;;  %v167_v29 = vpack.c.b8 %v166_v23, %v166_v23  ;;  %1302 = vmatprep.subr.bf16.mxu0 %v1301_v21  ;;  %v212_v30 = vunpack.c.0.s8 %v196_v27 }
  0x63   :  { %v213_v31 = vunpack.c.0.s8 %v197_v28  ;;  %v199_v32 = vsel %vm183_vm8, 16843009, %v1534_v1  ;;  %v161_v33 = vpack.c.b8 %v160_v24, %v160_v24  ;;  %1304 = vmatpush3.bf16.msra.mxu0 %v1301_v21  ;;  %v170_v35 = vpack.c.b16 %v139_v25, %v139_v25  ;;  %v377_v24 = vld [vmem:[#allocation7 + $0x60] sm:$0xff]  ;;  %v378_v25 = vld [vmem:[#allocation7 + $0x68] sm:$0xff] }
  0x64   :  { %v215_v34 = vunpack.c.0.s8 %v199_v32  ;;  %vm185_vm9 = vnez %v167_v29  ;;  %1306 = vmatprep.subr.bf16.mxu0 %v1305_v26  ;;  %v164_v36 = vpack.c.b16 %v136_v7, %v136_v7  ;;  %vm1760_vm10 = vcmp.ne.s32.totalorder %v212_v30, 0  ;;  %v379_v29 = vld [vmem:[#allocation7 + $0x70] sm:$0xff]  ;;  %v380_v30 = vld [vmem:[#allocation7 + $0x78] sm:$0xff] }
  0x65   :  { %296 = vadd.xlane.f32.xlu0 %v1099_v9  ;;  %298 = vadd.xlane.f32.xlu1 %v1100_v18  ;;  %vm1764_vm11 = vcmp.ne.s32.totalorder %v213_v31, 0  ;;  %v201_v41 = vsel %vm185_vm9, 16843009, %v1534_v1  ;;  %vm182_vm12 = vnez %v161_v33  ;;  %v1101_v46 = vsel %vm1760_vm10, 1.0, %v1533_v0  ;;  %v269_v33 = vld [vmem:[#allocation3 + $0x8] sm:$0xff]  ;;  %v872_v7 = vld [vmem:[#allocation10 + $0x38] sm:$0xff] }
  0x66   :  { %v1102_v47 = vsel %vm1764_vm11, 1.0, %v1533_v0  ;;  %vm1775_vm2 = vcmp.ne.s32.totalorder %v215_v34, 0  ;;  %v217_v49 = vunpack.c.0.s8 %v201_v41  ;;  %v198_v52 = vsel %vm182_vm12, 16843009, %v1534_v1  ;;  %v271_v34 = vld [vmem:[#allocation3 + $0x18] sm:$0xff] }
  0x67   :  { %v171_v54 = vpack.c.b8 %v170_v35, %v170_v35  ;;  %1308 = vmatpush3.bf16.msra.mxu0 %v1305_v26  ;;  %v165_v55 = vpack.c.b8 %v164_v36, %v164_v36  ;;  %v214_v56 = vunpack.c.0.s8 %v198_v52  ;;  %v1309_v57 = vpack.c.bf16 %v370_v38, %v369_v37  ;;  %v272_v38 = vld [vmem:[#allocation3 + $0x20] sm:$0xff] }
  0x68   :  { %v1313_v58 = vpack.c.bf16 %v372_v43, %v371_v42  ;;  %v1104_v59 = vsel %vm1775_vm2, 1.0, %v1533_v0  ;;  %v138_v60 = vunpack.c.2.s8 %v1738_v4  ;;  %vm1784_vm8 = vcmp.ne.s32.totalorder %v217_v49, 0 }
  0x69   :  { %300 = vadd.xlane.f32.xlu0 %v1101_v46  ;;  %302 = vadd.xlane.f32.xlu1 %v1102_v47  ;;  %vm187_vm4 = vnez %v171_v54  ;;  %vm184_vm7 = vnez %v165_v55  ;;  %vm1788_vm9 = vcmp.ne.s32.totalorder %v214_v56, 0  ;;  %v1317_v13 = vpack.c.bf16 %v374_v62, %v373_v61  ;;  %v274_v47 = vld [vmem:[#allocation3 + $0x30] sm:$0xff]  ;;  %v276_v61 = vld [vmem:[#allocation3 + $0x40] sm:$0xff]  ;;  %v277_v62 = vld [vmem:[#allocation3 + $0x48] sm:$0xff] }
  0x6a   :  { %v203_v6 = vsel %vm187_vm4, 16843009, %v1534_v1  ;;  %v200_v8 = vsel %vm184_vm7, 16843009, %v1534_v1  ;;  %1310 = vmatprep.subr.bf16.mxu0 %v1309_v57  ;;  %v1103_v9 = vsel %vm1788_vm9, 1.0, %v1533_v0  ;;  %v168_v11 = vpack.c.b16 %v138_v60, %v138_v60 }
  0x6b   :  { %v219_v4 = vunpack.c.0.s8 %v203_v6  ;;  %v216_v10 = vunpack.c.0.s8 %v200_v8  ;;  %1312 = vmatpush3.bf16.msra.mxu0 %v1309_v57  ;;  %v1106_v18 = vsel %vm1784_vm8, 1.0, %v1533_v0  ;;  %v1321_v22 = vpack.c.bf16 %v376_v17, %v375_v16  ;;  %v279_v17 = vld [vmem:[#allocation3 + $0x58] sm:$0xff] }
  0x6c   :  { %1314 = vmatprep.subr.bf16.mxu0 %v1313_v58  ;;  %v169_v15 = vpack.c.b8 %v168_v11, %v168_v11  ;;  %v1325_v28 = vpack.c.bf16 %v378_v25, %v377_v24  ;;  %v1329_v31 = vpack.c.bf16 %v380_v30, %v379_v29  ;;  %v280_v29 = vld [vmem:[#allocation3 + $0x60] sm:$0xff] }
  0x6d   :  { %306 = vadd.xlane.f32.xlu1 %v1104_v59  ;;  %304 = vadd.xlane.f32.xlu0 %v1103_v9  ;;  %vm1797_vm12 = vcmp.ne.s32.totalorder %v216_v10, 0  ;;  %vm1807_vm4 = vcmp.ne.s32.totalorder %v219_v4, 0  ;;  %v868_v59 = vld [vmem:[#allocation10 + $0x18] sm:$0xff] }
  0x6e   :  { %v1105_v19 = vsel %vm1797_vm12, 1.0, %v1533_v0  ;;  %vm186_vm7 = vnez %v169_v15  ;;  %v1108_v26 = vsel %vm1807_vm4, 1.0, %v1533_v0  ;;  %v870_v15 = vld [vmem:[#allocation10 + $0x28] sm:$0xff] }
  0x6f   :  { %1316 = vmatpush3.bf16.msra.mxu0 %v1313_v58  ;;  %v202_v21 = vsel %vm186_vm7, 16843009, %v1534_v1  ;;  %v867_v58 = vld [vmem:[#allocation10 + $0x10] sm:$0xff] }
  0x70   :  { %1318 = vmatprep.subr.bf16.mxu0 %v1317_v13  ;;  %v218_v23 = vunpack.c.0.s8 %v202_v21  ;;  %v1337_v3 = vpack.c.bf16 %v868_v59, %v867_v58  ;;  %v880_v58 = vld [vmem:[#allocation10 + $0x78] sm:$0xff] }
  0x71   :  { %310 = vadd.xlane.f32.xlu1 %v1106_v18  ;;  %308 = vadd.xlane.f32.xlu0 %v1105_v19  ;;  %v278_v18 = vld [vmem:[#allocation3 + $0x50] sm:$0xff]  ;;  %v1341_v19 = vpack.c.bf16 %v870_v15, %v869_v14 }
  0x72   :  { %vm1815_vm0 = vcmp.ne.s32.totalorder %v218_v23, 0 }
  0x73   :  { %1320 = vmatpush3.bf16.msra.mxu0 %v1317_v13  ;;  %v1107_v27 = vsel %vm1815_vm0, 1.0, %v1533_v0  ;;  %v865_v0 = vld [vmem:[#allocation10] sm:$0xff] }
  0x74   :  { %1322 = vmatprep.subr.bf16.mxu0 %v1321_v22  ;;  %v1333_v45 = vpack.c.bf16 %v866_v44, %v865_v0 }
  0x75   :  { %314 = vadd.xlane.f32.xlu1 %v1108_v26  ;;  %312 = vadd.xlane.f32.xlu0 %v1107_v27  ;;  %v871_v26 = vld [vmem:[#allocation10 + $0x30] sm:$0xff] }
  0x76   :  { %1334 = vmatprep.subr.bf16.mxu1 %v1333_v45  ;;  %v1345_v30 = vpack.c.bf16 %v872_v7, %v871_v26 }
  0x77   :  { %1324 = vmatpush3.bf16.msra.mxu0 %v1321_v22  ;;  %1336 = vmatpush3.bf16.msra.mxu1 %v1333_v45 }
  0x78   :  { %1326 = vmatprep.subr.bf16.mxu0 %v1325_v28  ;;  %1338 = vmatprep.subr.bf16.mxu1 %v1337_v3 }
  0x7b   :  { %1328 = vmatpush3.bf16.msra.mxu0 %v1325_v28  ;;  %1340 = vmatpush3.bf16.msra.mxu1 %v1337_v3  ;;  %v281_v28 = vld [vmem:[#allocation3 + $0x68] sm:$0xff] }
  0x7c   :  { %1330 = vmatprep.subr.bf16.mxu0 %v1329_v31  ;;  %1342 = vmatprep.subr.bf16.mxu1 %v1341_v19 }
  0x7f   :  { %1332 = vmatpush3.bf16.msra.mxu0 %v1329_v31  ;;  %1344 = vmatpush3.bf16.msra.mxu1 %v1341_v19 }
  0x80   :  { %1346 = vmatprep.subr.bf16.mxu1 %v1345_v30 }
  0x82   :  { %1222 = vmatmul.mubr.msk.f32.vlgmr.msra.gmra.mrb[0].mxu0 %vm1688_vm13, %v1535_v51  ;;  %vm1985_vm13 = vcmask 7168  }
  0x83   :  { %1224 = vmatprep.mubr.msk.f32.mxu0 %vm1692_vm14, %v1535_v51  ;;  %1348 = vmatpush3.bf16.msra.mxu1 %v1345_v30 }
  0x86   :  { %1225 = vmatmul.mubr.msk.f32.gmra.mrb[2].mxu0 %vm1703_vm15, %v1535_v51 }
  0x87   :  { %1227 = vmatprep.mubr.msk.f32.mxu0 %vm1711_vm1, %v1535_v51 }
  0x8a   :  { %1228 = vmatmul.mubr.msk.f32.gmra.mrb[4].mxu0 %vm1728_vm3, %v1535_v51 }
  0x8b   :  { %1230 = vmatprep.mubr.msk.f32.mxu0 %vm1732_vm5, %v1535_v51 }
  0x8e   :  { %1231 = vmatmul.mubr.msk.f32.gmra.mrb[6].mxu0 %vm1746_vm6, %v1535_v51 }
  0x8f   :  { %1233 = vmatprep.mubr.msk.f32.mxu0 %vm1760_vm10, %v1535_v51 }
  0x92   :  { %1234 = vmatmul.mubr.msk.f32.gmra.mrb[8].mxu0 %vm1764_vm11, %v1535_v51 }
  0x93   :  { %1236 = vmatprep.mubr.msk.f32.mxu0 %vm1788_vm9, %v1535_v51 }
  0x96   :  { %1237 = vmatmul.mubr.msk.f32.gmra.mrb[10].mxu0 %vm1775_vm2, %v1535_v51 }
  0x97   :  { %1239 = vmatprep.mubr.msk.f32.mxu0 %vm1797_vm12, %v1535_v51 }
  0x9a   :  { %1240 = vmatmul.mubr.msk.f32.gmra.mrb[12].mxu0 %vm1784_vm8, %v1535_v51 }
  0x9b   :  { %1242 = vmatprep.mubr.msk.f32.mxu0 %vm1815_vm0, %v1535_v51  ;;  %vm1986_vm0 = vmmov %vm1985_vm13 }
  0x9c   :  { %vm1987_vm14 = vmmov %vm1986_vm0 }
  0x9d   :  { %vm1988_vm15 = vmmov %vm1986_vm0 }
  0x9e   :  { %1243 = vmatmul.mubr.msk.f32.gmra.mrb[14].mxu0 %vm1807_vm4, %v1535_v51  ;;  %vm1989_vm1 = vmmov %vm1986_vm0 }
  0x9f   :  { %vm1990_vm3 = vmmov %vm1986_vm0 }
  0xa0   :  { %vm1991_vm10 = vmmov %vm1986_vm0 }
  0xa1   :  { %vm1992_vm11 = vmmov %vm1986_vm0 }
  0xa2   :  { %vm1993_vm8 = vmmov %vm1986_vm0 }
  0xa3   :  { %vm1994_vm9 = vmmov %vm1986_vm0 }
  0xa4   :  { %vm1995_vm4 = vmmov %vm1986_vm0 }
  0xa5   :  { %vm1996_vm7 = vmmov %vm1986_vm0 }
  0xe6   :  { %v285_v63 = vpop.xlane.xlu0 %284  ;;  %v289_v2 = vpop.xlane.xlu1 %288 }
  0xe7   :  { %v316_v12 = vadd.f32 %v285_v63, %v268_v50  ;;  %v318_v32 = vadd.f32 %v289_v2, %v270_v53  ;;  %v873_v63 = vld [vmem:[#allocation10 + $0x40] sm:$0xff]  ;;  %v874_v2 = vld [vmem:[#allocation10 + $0x48] sm:$0xff] }
  0xe9   :  { %333 = vst.msk [vmem:[#allocation3] sm:$0xff] %vm1985_vm13, %v316_v12 }
  0xea   :  { %335 = vst.msk [vmem:[#allocation3 + $0x10] sm:$0xff] %vm1986_vm0, %v318_v32  ;;  %v287_v35 = vpop.xlane.xlu0 %286  ;;  %v291_v36 = vpop.xlane.xlu1 %290  ;;  %v283_v32 = vld [vmem:[#allocation3 + $0x78] sm:$0xff] }
  0xeb   :  { %v317_v51 = vadd.f32 %v287_v35, %v269_v33  ;;  %v319_v37 = vadd.f32 %v291_v36, %v271_v34  ;;  %v282_v33 = vld [vmem:[#allocation3 + $0x70] sm:$0xff]  ;;  %v1349_v34 = vpack.c.bf16 %v874_v2, %v873_v63 }
  0xed   :  { %334 = vst.msk [vmem:[#allocation3 + $0x8] sm:$0xff] %vm1987_vm14, %v317_v51  ;;  %vm1997_vm14 = vmmov %vm1986_vm0  ;;  %1350 = vmatprep.subr.bf16.mxu1 %v1349_v34 }
  0xee   :  { %336 = vst.msk [vmem:[#allocation3 + $0x18] sm:$0xff] %vm1988_vm15, %v319_v37  ;;  %v293_v40 = vpop.xlane.xlu0 %292  ;;  %v295_v41 = vpop.xlane.xlu1 %294  ;;  %1352 = vmatpush3.bf16.msra.mxu1 %v1349_v34 }
  0xef   :  { %v320_v42 = vadd.f32 %v293_v40, %v272_v38  ;;  %v321_v43 = vadd.f32 %v295_v41, %v273_v39  ;;  %v875_v40 = vld [vmem:[#allocation10 + $0x50] sm:$0xff]  ;;  %v876_v41 = vld [vmem:[#allocation10 + $0x58] sm:$0xff] }
  0xf0   :  { %v1871_v46 = vld [vmem:[#allocation3] sm:$0xff] }
  0xf1   :  { %v625_v49 = vadd.f32 1.0, %v1871_v46  ;;  %337 = vst.msk [vmem:[#allocation3 + $0x20] sm:$0xff] %vm1989_vm1, %v320_v42  ;;  %v579_v52 = vld [vmem:[#allocation3 + $0x10] sm:$0xff]  ;;  %vm1998_vm1 = vmmov %vm1986_vm0 }
  0xf2   :  { %338 = vst.msk [vmem:[#allocation3 + $0x28] sm:$0xff] %vm1990_vm3, %v321_v43  ;;  %v297_v54 = vpop.xlane.xlu0 %296  ;;  %v299_v55 = vpop.xlane.xlu1 %298  ;;  %vm755_vm6 = vcmp.gt.f32.partialorder %v579_v52, 0.0  ;;  %v627_v10 = vadd.f32 1.0, %v579_v52  ;;  %v1353_v43 = vpack.c.bf16 %v876_v41, %v875_v40  ;;  %vm1999_vm3 = vmmov %vm1986_vm0  ;;  %v878_v52 = vld [vmem:[#allocation10 + $0x68] sm:$0xff] }
  0xf3   :  { %643 = vperm.xlu0 %1375, %v625_v49   ;;  %v322_v56 = vadd.f32 %v297_v54, %v274_v47  ;;  %v323_v57 = vadd.f32 %v299_v55, %v275_v48  ;;  %v771_v16 = vsel %vm755_vm6, 1, %v1534_v1  ;;  %v877_v49 = vld [vmem:[#allocation10 + $0x60] sm:$0xff]  ;;  %vm753_vm6 = vcmp.gt.f32.partialorder %v1871_v46, 0.0  ;;  %v562_v40 = vld [vmem:[#allocation9 + $0x8] sm:$0xff] }
  0xf4   :  { %v578_v60 = vld [vmem:[#allocation3 + $0x8] sm:$0xff]  ;;  %1354 = vmatprep.subr.bf16.mxu1 %v1353_v43  ;;  %v1357_v55 = vpack.c.bf16 %v878_v52, %v877_v49 }
  0xf5   :  { %v626_v5 = vadd.f32 1.0, %v578_v60  ;;  %vm754_vm5 = vcmp.gt.f32.partialorder %v578_v60, 0.0  ;;  %339 = vst.msk [vmem:[#allocation3 + $0x30] sm:$0xff] %vm1991_vm10, %v322_v56  ;;  %v580_v8 = vld [vmem:[#allocation3 + $0x18] sm:$0xff]  ;;  %1356 = vmatpush3.bf16.msra.mxu1 %v1353_v43  ;;  %v561_v43 = vld [vmem:[#allocation9] sm:$0xff] }
  0xf6   :  { %340 = vst.msk [vmem:[#allocation3 + $0x38] sm:$0xff] %vm1992_vm11, %v323_v57  ;;  %v770_v6 = vsel %vm754_vm5, 1, %v1534_v1  ;;  %v301_v9 = vpop.xlane.xlu0 %300  ;;  %v303_v4 = vpop.xlane.xlu1 %302  ;;  %vm756_vm2 = vcmp.gt.f32.partialorder %v580_v8, 0.0  ;;  %v628_v23 = vadd.f32 1.0, %v580_v8  ;;  %1358 = vmatprep.subr.bf16.mxu1 %v1357_v55  ;;  %v879_v57 = vld [vmem:[#allocation10 + $0x70] sm:$0xff] }
  0xf7   :  { %648 = vperm.xlu1 %1376, %v626_v5   ;;  %789 = vperm.xlu0 %1375, %v770_v6   ;;  %v324_v11 = vadd.f32 %v301_v9, %v276_v61  ;;  %v325_v13 = vadd.f32 %v303_v4, %v277_v62  ;;  %v772_v27 = vsel %vm756_vm2, 1, %v1534_v1  ;;  %v1361_v60 = vpack.c.bf16 %v880_v58, %v879_v57 }
  0xf8   :  { %v581_v20 = vld [vmem:[#allocation3 + $0x20] sm:$0xff]  ;;  %v769_v61 = vsel %vm753_vm6, 1, %v1534_v1 }
  0xf9   :  { %341 = vst.msk [vmem:[#allocation3 + $0x40] sm:$0xff] %vm1993_vm8, %v324_v11  ;;  %vm757_vm12 = vcmp.gt.f32.partialorder %v581_v20, 0.0  ;;  %v582_v31 = vld [vmem:[#allocation3 + $0x28] sm:$0xff]  ;;  %v629_v45 = vadd.f32 1.0, %v581_v20  ;;  %1360 = vmatpush3.bf16.msra.mxu1 %v1357_v55  ;;  %v564_v55 = vld [vmem:[#allocation9 + $0x18] sm:$0xff] }
  0xfa   :  { %342 = vst.msk [vmem:[#allocation3 + $0x48] sm:$0xff] %vm1994_vm9, %v325_v13  ;;  %v307_v21 = vpop.xlane.xlu1 %306  ;;  %v305_v22 = vpop.xlane.xlu0 %304  ;;  %v773_v12 = vsel %vm757_vm12, 1, %v1534_v1  ;;  %vm758_vm13 = vcmp.gt.f32.partialorder %v582_v31, 0.0  ;;  %v630_v37 = vadd.f32 1.0, %v582_v31  ;;  %1362 = vmatprep.subr.bf16.mxu1 %v1361_v60 }
  0xfb   :  { %653 = vperm.xlu1 %1376, %v627_v10   ;;  %792 = vperm.xlu0 %1375, %v771_v16   ;;  %v327_v24 = vadd.f32 %v307_v21, %v279_v17  ;;  %v326_v25 = vadd.f32 %v305_v22, %v278_v18  ;;  %v774_v42 = vsel %vm758_vm13, 1, %v1534_v1 }
  0xfc   :  { %v583_v35 = vld [vmem:[#allocation3 + $0x30] sm:$0xff] }
  0xfd   :  { %344 = vst.msk [vmem:[#allocation3 + $0x58] sm:$0xff] %vm1995_vm4, %v327_v24  ;;  %vm759_vm15 = vcmp.gt.f32.partialorder %v583_v35, 0.0  ;;  %v584_v47 = vld [vmem:[#allocation3 + $0x38] sm:$0xff]  ;;  %v631_v48 = vadd.f32 1.0, %v583_v35  ;;  %1364 = vmatpush3.bf16.msra.mxu1 %v1361_v60 }
  0xfe   :  { %343 = vst.msk [vmem:[#allocation3 + $0x50] sm:$0xff] %vm1996_vm7, %v326_v25  ;;  %v311_v0 = vpop.xlane.xlu1 %310  ;;  %v309_v44 = vpop.xlane.xlu0 %308  ;;  %v775_v54 = vsel %vm759_vm15, 1, %v1534_v1  ;;  %vm760_vm5 = vcmp.gt.f32.partialorder %v584_v47, 0.0  ;;  %v632_v3 = vadd.f32 1.0, %v584_v47  ;;  %v563_v47 = vld [vmem:[#allocation9 + $0x10] sm:$0xff] }
  0xff   :  { %658 = vperm.xlu1 %1376, %v628_v23   ;;  %795 = vperm.xlu0 %1375, %v772_v27   ;;  %v329_v50 = vadd.f32 %v311_v0, %v281_v28  ;;  %v328_v53 = vadd.f32 %v309_v44, %v280_v29  ;;  %v776_v59 = vsel %vm760_vm5, 1, %v1534_v1 }
 0x100   :  { %v585_v56 = vld [vmem:[#allocation3 + $0x40] sm:$0xff] }
 0x101   :  { %346 = vst.msk [vmem:[#allocation3 + $0x68] sm:$0xff] %vm1986_vm0, %v329_v50  ;;  %vm761_vm10 = vcmp.gt.f32.partialorder %v585_v56, 0.0  ;;  %v586_v62 = vld [vmem:[#allocation3 + $0x48] sm:$0xff]  ;;  %v633_v46 = vadd.f32 1.0, %v585_v56 }
 0x102   :  { %345 = vst.msk [vmem:[#allocation3 + $0x60] sm:$0xff] %vm1997_vm14, %v328_v53  ;;  %v315_v36 = vpop.xlane.xlu1 %314  ;;  %v313_v51 = vpop.xlane.xlu0 %312  ;;  %v777_v5 = vsel %vm761_vm10, 1, %v1534_v1  ;;  %vm762_vm11 = vcmp.gt.f32.partialorder %v586_v62, 0.0  ;;  %v634_v4 = vadd.f32 1.0, %v586_v62 }
 0x103   :  { %663 = vperm.xlu1 %1376, %v629_v45   ;;  %798 = vperm.xlu0 %1375, %v773_v12   ;;  %v331_v38 = vadd.f32 %v315_v36, %v283_v32  ;;  %v330_v39 = vadd.f32 %v313_v51, %v282_v33  ;;  %v778_v8 = vsel %vm762_vm11, 1, %v1534_v1 }
 0x104   :  { %v588_v6 = vld [vmem:[#allocation3 + $0x58] sm:$0xff] }
 0x105   :  { %348 = vst.msk [vmem:[#allocation3 + $0x78] sm:$0xff] %vm1998_vm1, %v331_v38  ;;  %vm764_vm2 = vcmp.gt.f32.partialorder %v588_v6, 0.0  ;;  %v587_v11 = vld [vmem:[#allocation3 + $0x50] sm:$0xff]  ;;  %v636_v16 = vadd.f32 1.0, %v588_v6 }
 0x106   :  { %347 = vst.msk [vmem:[#allocation3 + $0x70] sm:$0xff] %vm1999_vm3, %v330_v39  ;;  %v780_v10 = vsel %vm764_vm2, 1, %v1534_v1  ;;  %v635_v14 = vadd.f32 1.0, %v587_v11  ;;  %vm763_vm12 = vcmp.gt.f32.partialorder %v587_v11, 0.0 }
 0x107   :  { %668 = vperm.xlu1 %1376, %v630_v37   ;;  %801 = vperm.xlu0 %1375, %v774_v42   ;;  %v779_v24 = vsel %vm763_vm12, 1, %v1534_v1 }
 0x108   :  { %v590_v9 = vld [vmem:[#allocation3 + $0x68] sm:$0xff] }
 0x109   :  { %vm766_vm8 = vcmp.gt.f32.partialorder %v590_v9, 0.0  ;;  %v589_v18 = vld [vmem:[#allocation3 + $0x60] sm:$0xff]  ;;  %v638_v20 = vadd.f32 1.0, %v590_v9 }
 0x10a   :  { %v782_v15 = vsel %vm766_vm8, 1, %v1534_v1  ;;  %v637_v19 = vadd.f32 1.0, %v589_v18  ;;  %vm765_vm4 = vcmp.gt.f32.partialorder %v589_v18, 0.0 }
 0x10b   :  { %673 = vperm.xlu1 %1376, %v631_v48   ;;  %804 = vperm.xlu0 %1375, %v775_v54   ;;  %v781_v25 = vsel %vm765_vm4, 1, %v1534_v1 }
 0x10c   :  { %v592_v13 = vld [vmem:[#allocation3 + $0x78] sm:$0xff] }
 0x10d   :  { %vm768_vm9 = vcmp.gt.f32.partialorder %v592_v13, 0.0  ;;  %v591_v21 = vld [vmem:[#allocation3 + $0x70] sm:$0xff]  ;;  %v640_v23 = vadd.f32 1.0, %v592_v13 }
 0x10e   :  { %v784_v17 = vsel %vm768_vm9, 1, %v1534_v1  ;;  %v639_v22 = vadd.f32 1.0, %v591_v21  ;;  %vm767_vm7 = vcmp.gt.f32.partialorder %v591_v21, 0.0 }
 0x10f   :  { %786 = vperm.xlu1 %1376, %v769_v61   ;;  %807 = vperm.xlu0 %1375, %v776_v59   ;;  %v783_v26 = vsel %vm767_vm7, 1, %v1534_v1  ;;  %v565_v59 = vld [vmem:[#allocation9 + $0x20] sm:$0xff] }
 0x113   :  { %678 = vperm.xlu1 %1376, %v632_v3   ;;  %810 = vperm.xlu0 %1375, %v777_v5  }
 0x117   :  { %683 = vperm.xlu1 %1376, %v633_v46   ;;  %813 = vperm.xlu0 %1375, %v778_v8   ;;  %v566_v46 = vld [vmem:[#allocation9 + $0x28] sm:$0xff] }
 0x11b   :  { %688 = vperm.xlu1 %1376, %v634_v4   ;;  %819 = vperm.xlu0 %1375, %v780_v10   ;;  %v567_v10 = vld [vmem:[#allocation9 + $0x30] sm:$0xff] }
 0x11f   :  { %693 = vperm.xlu1 %1376, %v635_v14   ;;  %825 = vperm.xlu0 %1375, %v782_v15  }
 0x123   :  { %698 = vperm.xlu1 %1376, %v636_v16   ;;  %831 = vperm.xlu0 %1375, %v784_v17  }
 0x127   :  { %703 = vperm.xlu1 %1376, %v637_v19  }
 0x12b   :  { %708 = vperm.xlu1 %1376, %v638_v20  }
 0x12f   :  { %713 = vperm.xlu1 %1376, %v639_v22  }
 0x133   :  { %718 = vperm.xlu1 %1376, %v640_v23  }
 0x137   :  { %816 = vperm.xlu1 %1376, %v779_v24  }
 0x13b   :  { %822 = vperm.xlu1 %1376, %v781_v25  }
 0x13f   :  { %828 = vperm.xlu1 %1376, %v783_v26  }
 0x155   :  { %v1223_v7 = vpop.f32.mrb[0].mxu0 }
 0x156   :  { %v447_v27 = vpop.f32.mrb[1].mxu0  ;;  %v610_v49 = vadd.f32 %v1223_v7, %v562_v40 }
 0x157   :  { %v609_v54 = vadd.f32 %v561_v43, %v447_v27  ;;  %v568_v27 = vld [vmem:[#allocation9 + $0x38] sm:$0xff] }
 0x159   :  { %v1226_v28 = vpop.f32.mrb[2].mxu0 }
 0x15a   :  { %v457_v29 = vpop.f32.mrb[3].mxu0  ;;  %v612_v62 = vadd.f32 %v1226_v28, %v564_v55 }
 0x15b   :  { %v611_v56 = vadd.f32 %v563_v47, %v457_v29 }
 0x15d   :  { %v1229_v30 = vpop.f32.mrb[4].mxu0 }
 0x15e   :  { %v467_v31 = vpop.f32.mrb[5].mxu0  ;;  %v614_v14 = vadd.f32 %v1229_v30, %v566_v46 }
 0x15f   :  { %v613_v8 = vadd.f32 %v565_v59, %v467_v31 }
 0x161   :  { %v1903_v0 = vpop.f32.mrb[6].mxu0 }
 0x162   :  { %v477_v44 = vpop.f32.mrb[7].mxu0  ;;  %v616_v30 = vadd.f32 %v1903_v0, %v568_v27 }
 0x163   :  { %v615_v20 = vadd.f32 %v567_v10, %v477_v44 }
 0x165   :  { %v1905_v45 = vpop.f32.mrb[8].mxu0 }
 0x166   :  { %v1907_v50 = vpop.f32.mrb[9].mxu0 }
 0x169   :  { %v1909_v53 = vpop.f32.mrb[10].mxu0 }
 0x16a   :  { %v1911_v63 = vpop.f32.mrb[11].mxu0 }
 0x16d   :  { %v1913_v2 = vpop.f32.mrb[12].mxu0 }
 0x16e   :  { %v1915_v1 = vpop.f32.mrb[13].mxu0 }
 0x171   :  { %v1917_v12 = vpop.f32.mrb[14].mxu0 }
 0x172   :  { %v644_v32 = vpop.permute.xlu0 %643  ;;  %v1919_v33 = vpop.f32.mrb[15].mxu0 }
 0x173   :  { %1377 = vrcp.f32 %v644_v32  ;;  %v569_v32 = vld [vmem:[#allocation9 + $0x40] sm:$0xff] }
 0x176   :  { %v649_v34 = vpop.permute.xlu1 %648  ;;  %v790_v35 = vpop.permute.xlu0 %789 }
 0x177   :  { %1379 = vrcp.f32 %v649_v34  ;;  %vm834_vm0 = vcmp.eq.s32.totalorder %v790_v35, 1 }
 0x17a   :  { %v654_v36 = vpop.permute.xlu1 %653  ;;  %v793_v51 = vpop.permute.xlu0 %792 }
 0x17b   :  { %1381 = vrcp.f32 %v654_v36  ;;  %vm835_vm14 = vcmp.eq.s32.totalorder %v793_v51, 1  ;;  %v617_v51 = vadd.f32 %v569_v32, %v1907_v50 }
 0x17d   :  { %v1378_v48 = vpop.eup %1377 }
 0x17e   :  { %v659_v37 = vpop.permute.xlu1 %658  ;;  %v796_v38 = vpop.permute.xlu0 %795  ;;  %v722_v5 = vmul.f32 %v1378_v48, %v609_v54 }
 0x17f   :  { %1383 = vrcp.f32 %v659_v37  ;;  %vm836_vm15 = vcmp.eq.s32.totalorder %v796_v38, 1  ;;  %v570_v38 = vld [vmem:[#allocation9 + $0x48] sm:$0xff] }
 0x181   :  { %v1380_v52 = vpop.eup %1379 }
 0x182   :  { %v664_v39 = vpop.permute.xlu1 %663  ;;  %v799_v41 = vpop.permute.xlu0 %798  ;;  %v724_v61 = vmul.f32 %v1380_v52, %v610_v49 }
 0x183   :  { %1385 = vrcp.f32 %v664_v39  ;;  %vm837_vm1 = vcmp.eq.s32.totalorder %v799_v41, 1  ;;  %v618_v41 = vadd.f32 %v1905_v45, %v570_v38  ;;  %v571_v45 = vld [vmem:[#allocation9 + $0x50] sm:$0xff] }
 0x184   :  { %v850_v15 = vsel %vm834_vm0, %v724_v61, %v562_v40  ;;  %v574_v61 = vld [vmem:[#allocation9 + $0x68] sm:$0xff] }
 0x185   :  { %v1382_v58 = vpop.eup %1381 }
 0x186   :  { %v669_v42 = vpop.permute.xlu1 %668  ;;  %v802_v60 = vpop.permute.xlu0 %801  ;;  %v726_v6 = vmul.f32 %v1382_v58, %v611_v56 }
 0x187   :  { %1387 = vrcp.f32 %v669_v42  ;;  %vm838_vm3 = vcmp.eq.s32.totalorder %v802_v60, 1  ;;  %v619_v60 = vadd.f32 %v571_v45, %v1911_v63 }
 0x188   :  { %v851_v21 = vsel %vm835_vm14, %v726_v6, %v563_v47 }
 0x189   :  { %v1384_v3 = vpop.eup %1383 }
 0x18a   :  { %v674_v57 = vpop.permute.xlu1 %673  ;;  %v728_v13 = vmul.f32 %v1384_v3, %v612_v62  ;;  %v805_v17 = vpop.permute.xlu0 %804 }
 0x18b   :  { %1389 = vrcp.f32 %v674_v57  ;;  %vm839_vm5 = vcmp.eq.s32.totalorder %v805_v17, 1 }
 0x18c   :  { %v852_v24 = vsel %vm836_vm15, %v728_v13, %v564_v55  ;;  %v572_v55 = vld [vmem:[#allocation9 + $0x58] sm:$0xff] }
 0x18d   :  { %v1386_v4 = vpop.eup %1385  ;;  %v620_v58 = vadd.f32 %v1909_v53, %v572_v55  ;;  %v576_v53 = vld [vmem:[#allocation9 + $0x78] sm:$0xff] }
 0x18e   :  { %v787_v9 = vpop.permute.xlu1 %786  ;;  %v730_v18 = vmul.f32 %v1386_v4, %v613_v8  ;;  %v808_v28 = vpop.permute.xlu0 %807 }
 0x18f   :  { %vm833_vm13 = vcmp.eq.s32.totalorder %v787_v9, 1  ;;  %vm840_vm6 = vcmp.eq.s32.totalorder %v808_v28, 1 }
 0x190   :  { %v849_v11 = vsel %vm833_vm13, %v722_v5, %v561_v43  ;;  %v853_v7 = vsel %vm837_vm1, %v730_v18, %v565_v59  ;;  %v573_v5 = vld [vmem:[#allocation9 + $0x60] sm:$0xff]  ;;  %v624_v18 = vadd.f32 %v1917_v12, %v576_v53 }
 0x191   :  { %1277 = vmatprep.mubr.f32.mxu1 %v849_v11  ;;  %v1388_v16 = vpop.eup %1387 }
 0x192   :  { %v679_v19 = vpop.permute.xlu1 %678  ;;  %1278 = vmatmul.mubr.f32.vlgmr.msra.gmra.mrb[0].mxu1 %v850_v15  ;;  %v732_v23 = vmul.f32 %v1388_v16, %v614_v14  ;;  %v811_v35 = vpop.permute.xlu0 %810  ;;  %v575_v14 = vld [vmem:[#allocation9 + $0x70] sm:$0xff] }
 0x193   :  { %1391 = vrcp.f32 %v679_v19  ;;  %1280 = vmatprep.mubr.f32.mxu1 %v851_v21  ;;  %vm841_vm10 = vcmp.eq.s32.totalorder %v811_v35, 1 }
 0x194   :  { %v854_v29 = vsel %vm838_vm3, %v732_v23, %v566_v46  ;;  %v622_v46 = vadd.f32 %v1913_v2, %v574_v61  ;;  %v623_v2 = vadd.f32 %v575_v14, %v1919_v33 }
 0x195   :  { %v1390_v22 = vpop.eup %1389 }
 0x196   :  { %v734_v25 = vmul.f32 %v1390_v22, %v615_v20  ;;  %v684_v26 = vpop.permute.xlu1 %683  ;;  %1281 = vmatmul.mubr.f32.gmra.mrb[2].mxu1 %v852_v24  ;;  %v814_v43 = vpop.permute.xlu0 %813 }
 0x197   :  { %1393 = vrcp.f32 %v684_v26  ;;  %1283 = vmatprep.mubr.f32.mxu1 %v853_v7  ;;  %vm842_vm11 = vcmp.eq.s32.totalorder %v814_v43, 1 }
 0x198   :  { %v855_v44 = vsel %vm839_vm5, %v734_v25, %v567_v10  ;;  %v621_v10 = vadd.f32 %v573_v5, %v1915_v1 }
 0x19a   :  { %v689_v31 = vpop.permute.xlu1 %688  ;;  %1284 = vmatmul.mubr.f32.gmra.mrb[4].mxu1 %v854_v29  ;;  %v820_v57 = vpop.permute.xlu0 %819 }
 0x19b   :  { %1395 = vrcp.f32 %v689_v31  ;;  %1286 = vmatprep.mubr.f32.mxu1 %v855_v44  ;;  %vm844_vm8 = vcmp.eq.s32.totalorder %v820_v57, 1 }
 0x19d   :  { %v1392_v34 = vpop.eup %1391 }
 0x19e   :  { %v694_v36 = vpop.permute.xlu1 %693  ;;  %v736_v37 = vmul.f32 %v1392_v34, %v616_v30  ;;  %v826_v9 = vpop.permute.xlu0 %825 }
 0x19f   :  { %vm846_vm12 = vcmp.eq.s32.totalorder %v826_v9, 1 }
 0x1a0   :  { %v856_v39 = vsel %vm840_vm6, %v736_v37, %v568_v27 }
 0x1a1   :  { %v1394_v40 = vpop.eup %1393  ;;  %1287 = vmatmul.mubr.f32.gmra.mrb[6].mxu1 %v856_v39 }
 0x1a2   :  { %v738_v0 = vmul.f32 %v1394_v40, %v617_v51  ;;  %v699_v42 = vpop.permute.xlu1 %698  ;;  %v832_v1 = vpop.permute.xlu0 %831 }
 0x1a3   :  { %1397 = vrcp.f32 %v699_v42  ;;  %vm848_vm4 = vcmp.eq.s32.totalorder %v832_v1, 1 }
 0x1a4   :  { %v857_v47 = vsel %vm841_vm10, %v738_v0, %v569_v32  ;;  %1399 = vrcp.f32 %v694_v36 }
 0x1a5   :  { %v1396_v48 = vpop.eup %1395  ;;  %1289 = vmatprep.mubr.f32.mxu1 %v857_v47 }
 0x1a6   :  { %v740_v49 = vmul.f32 %v1396_v48, %v618_v41  ;;  %v704_v52 = vpop.permute.xlu1 %703 }
 0x1a8   :  { %v858_v50 = vsel %vm842_vm11, %v740_v49, %v570_v38 }
 0x1a9   :  { %1290 = vmatmul.mubr.f32.gmra.mrb[8].mxu1 %v858_v50 }
 0x1aa   :  { %v709_v54 = vpop.permute.xlu1 %708 }
 0x1ab   :  { %1401 = vrcp.f32 %v709_v54 }
 0x1ac   :  { %1403 = vrcp.f32 %v704_v52 }
 0x1ad   :  { %v1398_v59 = vpop.eup %1397 }
 0x1ae   :  { %v714_v56 = vpop.permute.xlu1 %713  ;;  %v1400_v3 = vpop.eup %1399  ;;  %v744_v6 = vmul.f32 %v1398_v59, %v620_v58 }
 0x1af   :  { %1405 = vrcp.f32 %v714_v56  ;;  %v742_v4 = vmul.f32 %v1400_v3, %v619_v60 }
 0x1b0   :  { %v860_v16 = vsel %vm844_vm8, %v744_v6, %v572_v55 }
 0x1b2   :  { %v719_v62 = vpop.permute.xlu1 %718 }
 0x1b3   :  { %1407 = vrcp.f32 %v719_v62 }
 0x1b5   :  { %v1402_v8 = vpop.eup %1401 }
 0x1b6   :  { %v817_v11 = vpop.permute.xlu1 %816  ;;  %v1404_v13 = vpop.eup %1403  ;;  %v748_v15 = vmul.f32 %v1402_v8, %v622_v46 }
 0x1b7   :  { %vm843_vm2 = vcmp.eq.s32.totalorder %v817_v11, 1  ;;  %v746_v17 = vmul.f32 %v1404_v13, %v621_v10 }
 0x1b8   :  { %v859_v63 = vsel %vm843_vm2, %v742_v4, %v571_v45  ;;  %v862_v23 = vsel %vm846_vm12, %v748_v15, %v574_v61 }
 0x1b9   :  { %1292 = vmatprep.mubr.f32.mxu1 %v859_v63  ;;  %v1406_v20 = vpop.eup %1405 }
 0x1ba   :  { %v823_v19 = vpop.permute.xlu1 %822  ;;  %1293 = vmatmul.mubr.f32.gmra.mrb[10].mxu1 %v860_v16  ;;  %v750_v25 = vmul.f32 %v1406_v20, %v623_v2 }
 0x1bb   :  { %vm845_vm9 = vcmp.eq.s32.totalorder %v823_v19, 1 }
 0x1bc   :  { %v861_v21 = vsel %vm845_vm9, %v746_v17, %v573_v5 }
 0x1bd   :  { %v1408_v22 = vpop.eup %1407  ;;  %1295 = vmatprep.mubr.f32.mxu1 %v861_v21 }
 0x1be   :  { %v752_v24 = vmul.f32 %v1408_v22, %v624_v18  ;;  %v829_v26 = vpop.permute.xlu1 %828  ;;  %1296 = vmatmul.mubr.f32.gmra.mrb[12].mxu1 %v862_v23 }
 0x1bf   :  { %vm847_vm7 = vcmp.eq.s32.totalorder %v829_v26, 1 }
 0x1c0   :  { %v863_v7 = vsel %vm847_vm7, %v750_v25, %v575_v14  ;;  %v864_v12 = vsel %vm848_vm4, %v752_v24, %v576_v53 }
 0x1c1   :  { %1298 = vmatprep.mubr.f32.mxu1 %v863_v7 }
 0x1c2   :  { %1299 = vmatmul.mubr.f32.gmra.mrb[14].mxu1 %v864_v12 }
 0x265   :  { %v1279_v33 = vpop.f32.mrb[0].mxu1 }
 0x266   :  { %v1027_v27 = vmul.f32 0.01, %v1279_v33  ;;  %v947_v28 = vpop.f32.mrb[1].mxu1 }
 0x267   :  { %v1026_v29 = vmul.f32 0.01, %v947_v28 }
 0x268   :  { %v1043_v30 = vmax.f32 %v1279_v33, %v1027_v27 }
 0x269   :  { %v1042_v31 = vmax.f32 %v947_v28, %v1026_v29  ;;  %v1282_v44 = vpop.f32.mrb[2].mxu1 }
 0x26a   :  { %1059 = vst [vmem:[#allocation12 + $0x8] sm:$0xff] %v1043_v30  ;;  %v1029_v32 = vmul.f32 0.01, %v1282_v44  ;;  %v957_v34 = vpop.f32.mrb[3].mxu1 }
 0x26b   :  { %1058 = vst [vmem:[#allocation12] sm:$0xff] %v1042_v31  ;;  %v1028_v35 = vmul.f32 0.01, %v957_v34 }
 0x26c   :  { %v1045_v36 = vmax.f32 %v1282_v44, %v1029_v32 }
 0x26d   :  { %v1044_v51 = vmax.f32 %v957_v34, %v1028_v35  ;;  %v1285_v37 = vpop.f32.mrb[4].mxu1 }
 0x26e   :  { %1061 = vst [vmem:[#allocation12 + $0x18] sm:$0xff] %v1045_v36  ;;  %v1031_v38 = vmul.f32 0.01, %v1285_v37  ;;  %v967_v39 = vpop.f32.mrb[5].mxu1 }
 0x26f   :  { %1060 = vst [vmem:[#allocation12 + $0x10] sm:$0xff] %v1044_v51  ;;  %v1030_v40 = vmul.f32 0.01, %v967_v39 }
 0x270   :  { %v1047_v41 = vmax.f32 %v1285_v37, %v1031_v38 }
 0x271   :  { %v1046_v0 = vmax.f32 %v967_v39, %v1030_v40 }
 0x272   :  { %1063 = vst [vmem:[#allocation12 + $0x28] sm:$0xff] %v1047_v41 }
 0x273   :  { %1062 = vst [vmem:[#allocation12 + $0x20] sm:$0xff] %v1046_v0 }
 0x274   :  { %v1288_v42 = vpop.f32.mrb[6].mxu1 }
 0x275   :  { %v1033_v43 = vmul.f32 0.01, %v1288_v42  ;;  %v977_v47 = vpop.f32.mrb[7].mxu1 }
 0x276   :  { %v1032_v48 = vmul.f32 0.01, %v977_v47 }
 0x277   :  { %v1049_v49 = vmax.f32 %v1288_v42, %v1033_v43 }
 0x278   :  { %v1048_v52 = vmax.f32 %v977_v47, %v1032_v48 }
 0x279   :  { %1065 = vst [vmem:[#allocation12 + $0x38] sm:$0xff] %v1049_v49 }
 0x27a   :  { %1064 = vst [vmem:[#allocation12 + $0x30] sm:$0xff] %v1048_v52 }
 0x27c   :  { %v1291_v50 = vpop.f32.mrb[8].mxu1 }
 0x27d   :  { %v1035_v54 = vmul.f32 0.01, %v1291_v50  ;;  %v987_v55 = vpop.f32.mrb[9].mxu1 }
 0x27e   :  { %v1034_v56 = vmul.f32 0.01, %v987_v55 }
 0x27f   :  { %v1051_v45 = vmax.f32 %v1291_v50, %v1035_v54 }
 0x280   :  { %v1050_v57 = vmax.f32 %v987_v55, %v1034_v56 }
 0x281   :  { %1067 = vst [vmem:[#allocation12 + $0x48] sm:$0xff] %v1051_v45 }
 0x282   :  { %1066 = vst [vmem:[#allocation12 + $0x40] sm:$0xff] %v1050_v57 }
 0x28d   :  { %v1294_v58 = vpop.f32.mrb[10].mxu1 }
 0x28e   :  { %v1037_v59 = vmul.f32 0.01, %v1294_v58  ;;  %v997_v60 = vpop.f32.mrb[11].mxu1 }
 0x28f   :  { %v1036_v61 = vmul.f32 0.01, %v997_v60 }
 0x290   :  { %v1053_v62 = vmax.f32 %v1294_v58, %v1037_v59 }
 0x291   :  { %v1052_v3 = vmax.f32 %v997_v60, %v1036_v61  ;;  %v1297_v5 = vpop.f32.mrb[12].mxu1 }
 0x292   :  { %1069 = vst [vmem:[#allocation12 + $0x58] sm:$0xff] %v1053_v62  ;;  %v1039_v6 = vmul.f32 0.01, %v1297_v5  ;;  %v1007_v46 = vpop.f32.mrb[13].mxu1 }
 0x293   :  { %1068 = vst [vmem:[#allocation12 + $0x50] sm:$0xff] %v1052_v3  ;;  %v1038_v8 = vmul.f32 0.01, %v1007_v46 }
 0x294   :  { %v1055_v9 = vmax.f32 %v1297_v5, %v1039_v6 }
 0x295   :  { %v1054_v4 = vmax.f32 %v1007_v46, %v1038_v8  ;;  %v1300_v10 = vpop.f32.mrb[14].mxu1 }
 0x296   :  { %1071 = vst [vmem:[#allocation12 + $0x68] sm:$0xff] %v1055_v9  ;;  %v1041_v11 = vmul.f32 0.01, %v1300_v10  ;;  %v1017_v13 = vpop.f32.mrb[15].mxu1 }
 0x297   :  { %1070 = vst [vmem:[#allocation12 + $0x60] sm:$0xff] %v1054_v4  ;;  %v1040_v53 = vmul.f32 0.01, %v1017_v13 }
 0x298   :  { %v1057_v14 = vmax.f32 %v1300_v10, %v1041_v11 }
 0x299   :  { %v1056_v63 = vmax.f32 %v1017_v13, %v1040_v53 }
 0x29a   :  { %1073 = vst [vmem:[#allocation12 + $0x78] sm:$0xff] %v1057_v14 }
 0x29b   :  { %1072 = vst [vmem:[#allocation12 + $0x70] sm:$0xff] %v1056_v63 }
 0x29c   :  { %1508 = shalt.err (!%p1505_p8)
}
 0x29d   :  { %s1509_s15 = scalar_lea.hbm %s1949_s4, 2048 }
 0x29e   :  { %p1510_p9 = scmp.ne.s32.totalorder %s1949_s4, %s1509_s15  ;;  %p1513_p10 = scmp.lt.u32.totalorder %s1509_s15, %s1949_s4 }
 0x2a0   :  { %p1515_p11 = pnand %p1513_p10, %p1510_p9 }
 0x2a2   :  { %1518 = shalt.err (!%p1515_p11)
}
 0x2a3   :  { %1085 = dma.vmem_to_hbm [thread:$0]  %s1080_s12, 2048, %s1949_s4, [#allocation6], %s1529_s27, %s1529_s27, %s1530_s28  }
 0x2a4   :  { %1525 = dma.done.wait [#allocation6], 2048  }
 0x2a5   :  { %1526 = vsyncadd [#allocation6], 4294965248 }
 0x2a6   :  { %1089 = vsyncpa [#allocation5], 1 }
 0x2a7   :  { %1090 = vsyncpa [#allocation8], 1 }
 0x2a8   :  { %1091 = vsyncpa [#allocation11], 1 }
 0x2a9   :  { %1092 = vsyncpa [#allocation6], 1 }

</bundles_post_ra>
